<compile_context>
chip_gen: v7x
topology: tpu7x:2x2x1
jax: 0.10.0
libtpu: 0.0.40
codegen_flags: <defaults>
</compile_context>

<pallas_src>
import jax
import jax.numpy as jnp
from jax.experimental import pallas as pl
from jax.experimental.pallas import tpu as pltpu


def _round_up(x, m):
    return ((x + m - 1) // m) * m


def _softplus(x):
    # numerically stable softplus: max(x,0) + log(1 + exp(-|x|))
    return jnp.maximum(x, 0.0) + jnp.log(1.0 + jnp.exp(-jnp.abs(x)))


def beta_actor_kernel(x_ref,
                      w1_ref, b1_ref,
                      w2_ref, b2_ref,
                      wh_ref, bh_ref,
                      alpha_ref, beta_ref):
    x = x_ref[...]

    # layer 1: tanh(x @ W1 + b1)
    h = jnp.dot(x, w1_ref[...], preferred_element_type=jnp.float32) + b1_ref[...]
    h = jnp.tanh(h)

    # layer 2: tanh(h @ W2 + b2)
    h = jnp.dot(h, w2_ref[...], preferred_element_type=jnp.float32) + b2_ref[...]
    h = jnp.tanh(h)

    # fused alpha||beta head (single matmul, single softplus), split into the
    # two narrow outputs in-kernel (static lane slices).
    z = jnp.dot(h, wh_ref[...], preferred_element_type=jnp.float32) + bh_ref[...]
    z = _softplus(z) + 1.0

    action_dim = alpha_ref.shape[-1]
    alpha_ref[...] = z[:, :action_dim]
    beta_ref[...] = z[:, action_dim:]


def _batch_tiling(B, tb_max=1024):
    """Pick (tile_rows, num_tiles) for the batch axis.

    Small B: one grid step with a full-dim block (exempt from the x8 rule).
    Large B: an even number of near-equal x8-aligned tiles so the 'parallel'
    batch axis splits evenly across the two v7x TensorCores, with the ragged
    last tile handled by Pallas edge masking (no HBM padding copies).
    """
    if B < 512:
        return B, 1
    num_tiles = pl.cdiv(B, tb_max)
    if num_tiles % 2 == 1:
        num_tiles += 1
    tb = _round_up(pl.cdiv(B, num_tiles), 8)
    return tb, pl.cdiv(B, tb)


@jax.jit
def beta_actor_forward(state, params):
    """state: [B, state_dim] f32. params: dict of weights (see init_params)."""
    B, state_dim = state.shape
    net_width = params["w1"].shape[1]
    action_dim = params["wh"].shape[1] // 2

    TB, num_tiles = _batch_tiling(B)

    row_map = lambda i: (i, 0)     # batch-tiled arrays
    const_map = lambda i: (0, 0)   # weights/biases: VMEM-resident across steps

    out_sds = jax.ShapeDtypeStruct((B, action_dim), jnp.float32)

    alpha, beta = pl.pallas_call(
        beta_actor_kernel,
        out_shape=(out_sds, out_sds),
        grid=(num_tiles,),
        in_specs=[
            pl.BlockSpec((TB, state_dim), row_map),                 # state tile
            pl.BlockSpec((state_dim, net_width), const_map),        # W1 (resident)
            pl.BlockSpec((1, net_width), const_map),                # b1
            pl.BlockSpec((net_width, net_width), const_map),        # W2
            pl.BlockSpec((1, net_width), const_map),                # b2
            pl.BlockSpec((net_width, 2 * action_dim), const_map),   # fused head W
            pl.BlockSpec((1, 2 * action_dim), const_map),           # fused head b
        ],
        out_specs=(
            pl.BlockSpec((TB, action_dim), row_map),                # alpha
            pl.BlockSpec((TB, action_dim), row_map),                # beta
        ),
        compiler_params=pltpu.CompilerParams(
            dimension_semantics=("parallel",),   # shard batch over TCs (v7x megacore)
        ),
    )(state, params["w1"], params["b1"], params["w2"], params["b2"],
      params["wh"], params["bh"])

    return alpha, beta


def init_params(key, state_dim, action_dim, net_width):
    """Deterministic synthetic parameters. Linear weights stored as [in, out];
    biases stored as [1, out] so they broadcast cleanly inside the kernel.
    The fused alpha||beta head ('wh'/'bh') is precomputed here, once, so the
    forward path does no per-call concatenation."""
    ks = jax.random.split(key, 8)

    def uniform(k, shape, fan_in):
        bound = 1.0 / jnp.sqrt(jnp.float32(fan_in))
        return jax.random.uniform(k, shape, jnp.float32, -bound, bound)

    p = {
        "w1": uniform(ks[0], (state_dim, net_width), state_dim),
        "b1": uniform(ks[1], (1, net_width), state_dim),
        "w2": uniform(ks[2], (net_width, net_width), net_width),
        "b2": uniform(ks[3], (1, net_width), net_width),
        "wa": uniform(ks[4], (net_width, action_dim), net_width),
        "ba": uniform(ks[5], (1, action_dim), net_width),
        "wb": uniform(ks[6], (net_width, action_dim), net_width),
        "bb": uniform(ks[7], (1, action_dim), net_width),
    }
    p["wh"] = jnp.concatenate([p["wa"], p["wb"]], axis=1)
    p["bh"] = jnp.concatenate([p["ba"], p["bb"]], axis=1)
    return p


def reference_forward(state, p):
    a = jnp.tanh(state @ p["w1"] + p["b1"])
    a = jnp.tanh(a @ p["w2"] + p["b2"])
    alpha = jax.nn.softplus(a @ p["wa"] + p["ba"]) + 1.0
    beta = jax.nn.softplus(a @ p["wb"] + p["bb"]) + 1.0
    return alpha, beta


if __name__ == "__main__":
    key = jax.random.PRNGKey(0)
    k_state, k_params = jax.random.split(key)

    B, state_dim, action_dim, net_width = 2, 16, 4, 32
    state = jax.random.normal(k_state, (B, state_dim), jnp.float32)
    params = init_params(k_params, state_dim, action_dim, net_width)

    alpha, beta = beta_actor_forward(state, params)
    alpha, beta = jax.block_until_ready((alpha, beta))

    ref_alpha, ref_beta = reference_forward(state, params)
    assert alpha.shape == (B, action_dim) and beta.shape == (B, action_dim)
    assert jnp.allclose(alpha, ref_alpha, atol=1e-5, rtol=1e-5)
    assert jnp.allclose(beta, ref_beta, atol=1e-5, rtol=1e-5)
    assert bool(jnp.all(alpha > 1.0)) and bool(jnp.all(beta > 1.0))

    # small non-multiple-of-8 batch: single full-dim block path
    s9 = jax.random.normal(jax.random.PRNGKey(2), (9, state_dim), jnp.float32)
    a9, b9 = jax.block_until_ready(beta_actor_forward(s9, params))
    ra9, rb9 = reference_forward(s9, params)
    assert jnp.allclose(a9, ra9, atol=1e-5, rtol=1e-5)
    assert jnp.allclose(b9, rb9, atol=1e-5, rtol=1e-5)

    # larger batch spanning multiple grid steps with a ragged (masked) edge tile
    big_state = jax.random.normal(jax.random.PRNGKey(1), (1030, state_dim), jnp.float32)
    a2, b2 = jax.block_until_ready(beta_actor_forward(big_state, params))
    ra2, rb2 = reference_forward(big_state, params)
    assert a2.shape == (1030, action_dim) and b2.shape == (1030, action_dim)
    assert jnp.allclose(a2, ra2, atol=1e-5, rtol=1e-5)
    assert jnp.allclose(b2, rb2, atol=1e-5, rtol=1e-5)

    print("KERNEL_OK")
</pallas_src>

<mosaic_0001>
module attributes {stable_mosaic.version = 11 : i64} {
  func.func @beta_actor_kernel(%arg0: i32, %arg1: memref<2x16xf32, #tpu.memory_space<vmem>>, %arg2: memref<16x32xf32, #tpu.memory_space<vmem>>, %arg3: memref<1x32xf32, #tpu.memory_space<vmem>>, %arg4: memref<32x32xf32, #tpu.memory_space<vmem>>, %arg5: memref<1x32xf32, #tpu.memory_space<vmem>>, %arg6: memref<32x8xf32, #tpu.memory_space<vmem>>, %arg7: memref<1x8xf32, #tpu.memory_space<vmem>>, %arg8: memref<2x4xf32, #tpu.memory_space<vmem>>, %arg9: memref<2x4xf32, #tpu.memory_space<vmem>>) attributes {dimension_semantics = [#tpu.dimension_semantics<parallel>], iteration_bounds = array<i64: 1>, scalar_prefetch = 0 : i64, scratch_operands = 0 : i64, tpu.core_type = #tpu.core_type<tc>, window_params = [{transform_indices = @transform_0, window_bounds = array<i64: 2, 16>}, {pipeline_mode = #tpu.pipeline_mode<synchronous>, transform_indices = @transform_1, window_bounds = array<i64: 16, 32>}, {pipeline_mode = #tpu.pipeline_mode<synchronous>, transform_indices = @transform_2, window_bounds = array<i64: 1, 32>}, {pipeline_mode = #tpu.pipeline_mode<synchronous>, transform_indices = @transform_3, window_bounds = array<i64: 32, 32>}, {pipeline_mode = #tpu.pipeline_mode<synchronous>, transform_indices = @transform_4, window_bounds = array<i64: 1, 32>}, {pipeline_mode = #tpu.pipeline_mode<synchronous>, transform_indices = @transform_5, window_bounds = array<i64: 32, 8>}, {pipeline_mode = #tpu.pipeline_mode<synchronous>, transform_indices = @transform_6, window_bounds = array<i64: 1, 8>}, {transform_indices = @transform_7, window_bounds = array<i64: 2, 4>}, {transform_indices = @transform_8, window_bounds = array<i64: 2, 4>}]} {
    %c0 = arith.constant 0 : index
    %c0_0 = arith.constant 0 : index
    %0 = vector.load %arg1[%c0, %c0_0] : memref<2x16xf32, #tpu.memory_space<vmem>>, vector<2x16xf32>
    %c0_1 = arith.constant 0 : index
    %c0_2 = arith.constant 0 : index
    %1 = vector.load %arg2[%c0_1, %c0_2] : memref<16x32xf32, #tpu.memory_space<vmem>>, vector<16x32xf32>
    %cst = arith.constant dense<0.000000e+00> : vector<2x32xf32>
    %2 = tpu.matmul %0, %1, %cst {dimension_numbers = #tpu.dot_dimension_numbers<[1], [0], [0], [1], [0, 0, 1, 1], [], []>} : vector<2x16xf32>, vector<16x32xf32>, vector<2x32xf32> -> vector<2x32xf32>
    %c0_3 = arith.constant 0 : index
    %c0_4 = arith.constant 0 : index
    %3 = vector.load %arg3[%c0_3, %c0_4] : memref<1x32xf32, #tpu.memory_space<vmem>>, vector<1x32xf32>
    %4 = vector.broadcast %3 : vector<1x32xf32> to vector<2x32xf32>
    %5 = arith.addf %2, %4 : vector<2x32xf32>
    %6 = math.tanh %5 : vector<2x32xf32>
    %c0_5 = arith.constant 0 : index
    %c0_6 = arith.constant 0 : index
    %7 = vector.load %arg4[%c0_5, %c0_6] : memref<32x32xf32, #tpu.memory_space<vmem>>, vector<32x32xf32>
    %cst_7 = arith.constant dense<0.000000e+00> : vector<2x32xf32>
    %8 = tpu.matmul %6, %7, %cst_7 {dimension_numbers = #tpu.dot_dimension_numbers<[1], [0], [0], [1], [0, 0, 1, 1], [], []>} : vector<2x32xf32>, vector<32x32xf32>, vector<2x32xf32> -> vector<2x32xf32>
    %c0_8 = arith.constant 0 : index
    %c0_9 = arith.constant 0 : index
    %9 = vector.load %arg5[%c0_8, %c0_9] : memref<1x32xf32, #tpu.memory_space<vmem>>, vector<1x32xf32>
    %10 = vector.broadcast %9 : vector<1x32xf32> to vector<2x32xf32>
    %11 = arith.addf %8, %10 : vector<2x32xf32>
    %12 = math.tanh %11 : vector<2x32xf32>
    %c0_10 = arith.constant 0 : index
    %c0_11 = arith.constant 0 : index
    %13 = vector.load %arg6[%c0_10, %c0_11] : memref<32x8xf32, #tpu.memory_space<vmem>>, vector<32x8xf32>
    %cst_12 = arith.constant dense<0.000000e+00> : vector<2x8xf32>
    %14 = tpu.matmul %12, %13, %cst_12 {dimension_numbers = #tpu.dot_dimension_numbers<[1], [0], [0], [1], [0, 0, 1, 1], [], []>} : vector<2x32xf32>, vector<32x8xf32>, vector<2x8xf32> -> vector<2x8xf32>
    %c0_13 = arith.constant 0 : index
    %c0_14 = arith.constant 0 : index
    %15 = vector.load %arg7[%c0_13, %c0_14] : memref<1x8xf32, #tpu.memory_space<vmem>>, vector<1x8xf32>
    %16 = vector.broadcast %15 : vector<1x8xf32> to vector<2x8xf32>
    %17 = arith.addf %14, %16 : vector<2x8xf32>
    %cst_15 = arith.constant 0.000000e+00 : f32
    %18 = vector.broadcast %cst_15 : f32 to vector<2x8xf32>
    %19 = arith.maximumf %17, %18 : vector<2x8xf32>
    %20 = math.absf %17 : vector<2x8xf32>
    %cst_16 = arith.constant 0.000000e+00 : f32
    %21 = vector.broadcast %cst_16 : f32 to vector<2x8xf32>
    %22 = arith.subf %21, %20 : vector<2x8xf32>
    %23 = math.exp %22 : vector<2x8xf32>
    %cst_17 = arith.constant 1.000000e+00 : f32
    %24 = vector.broadcast %cst_17 : f32 to vector<2x8xf32>
    %25 = arith.addf %24, %23 : vector<2x8xf32>
    %26 = math.log %25 : vector<2x8xf32>
    %27 = arith.addf %19, %26 : vector<2x8xf32>
    %cst_18 = arith.constant 1.000000e+00 : f32
    %28 = vector.broadcast %cst_18 : f32 to vector<2x8xf32>
    %29 = arith.addf %27, %28 : vector<2x8xf32>
    %30 = vector.extract_strided_slice %29 {offsets = [0, 0], sizes = [2, 4], strides = [1, 1]} : vector<2x8xf32> to vector<2x4xf32>
    %c0_19 = arith.constant 0 : index
    %c0_20 = arith.constant 0 : index
    %31 = vector.load %arg8[%c0_19, %c0_20] : memref<2x4xf32, #tpu.memory_space<vmem>>, vector<2x4xf32>
    tpu.vector_store %arg8[%c0_19, %c0_20], %30 {strides = array<i32>} : memref<2x4xf32, #tpu.memory_space<vmem>>, vector<2x4xf32>,
    %32 = vector.extract_strided_slice %29 {offsets = [0, 4], sizes = [2, 4], strides = [1, 1]} : vector<2x8xf32> to vector<2x4xf32>
    %c0_21 = arith.constant 0 : index
    %c0_22 = arith.constant 0 : index
    %33 = vector.load %arg9[%c0_21, %c0_22] : memref<2x4xf32, #tpu.memory_space<vmem>>, vector<2x4xf32>
    tpu.vector_store %arg9[%c0_21, %c0_22], %32 {strides = array<i32>} : memref<2x4xf32, #tpu.memory_space<vmem>>, vector<2x4xf32>,
    return
  }
  func.func @transform_0(%arg0: i32) -> (i32, i32) {
    %c0_i32 = arith.constant 0 : i32
    %c0_i32_0 = arith.constant 0 : i32
    return %arg0, %c0_i32 : i32, i32
  }
  func.func @transform_1(%arg0: i32) -> (i32, i32) {
    %c0_i32 = arith.constant 0 : i32
    %c0_i32_0 = arith.constant 0 : i32
    %c0_i32_1 = arith.constant 0 : i32
    return %c0_i32, %c0_i32_0 : i32, i32
  }
  func.func @transform_2(%arg0: i32) -> (i32, i32) {
    %c0_i32 = arith.constant 0 : i32
    %c0_i32_0 = arith.constant 0 : i32
    %c0_i32_1 = arith.constant 0 : i32
    return %c0_i32, %c0_i32_0 : i32, i32
  }
  func.func @transform_3(%arg0: i32) -> (i32, i32) {
    %c0_i32 = arith.constant 0 : i32
    %c0_i32_0 = arith.constant 0 : i32
    %c0_i32_1 = arith.constant 0 : i32
    return %c0_i32, %c0_i32_0 : i32, i32
  }
  func.func @transform_4(%arg0: i32) -> (i32, i32) {
    %c0_i32 = arith.constant 0 : i32
    %c0_i32_0 = arith.constant 0 : i32
    %c0_i32_1 = arith.constant 0 : i32
    return %c0_i32, %c0_i32_0 : i32, i32
  }
  func.func @transform_5(%arg0: i32) -> (i32, i32) {
    %c0_i32 = arith.constant 0 : i32
    %c0_i32_0 = arith.constant 0 : i32
    %c0_i32_1 = arith.constant 0 : i32
    return %c0_i32, %c0_i32_0 : i32, i32
  }
  func.func @transform_6(%arg0: i32) -> (i32, i32) {
    %c0_i32 = arith.constant 0 : i32
    %c0_i32_0 = arith.constant 0 : i32
    %c0_i32_1 = arith.constant 0 : i32
    return %c0_i32, %c0_i32_0 : i32, i32
  }
  func.func @transform_7(%arg0: i32) -> (i32, i32) {
    %c0_i32 = arith.constant 0 : i32
    %c0_i32_0 = arith.constant 0 : i32
    return %arg0, %c0_i32 : i32, i32
  }
  func.func @transform_8(%arg0: i32) -> (i32, i32) {
    %c0_i32 = arith.constant 0 : i32
    %c0_i32_0 = arith.constant 0 : i32
    return %arg0, %c0_i32 : i32, i32
  }
}

</mosaic_0001>

<bundles_post_ra>
// kernel: beta_actor_forward.1
= control target key start
LH: loop header
LB: loop body
LE: loop exit
PB: predicated region body
PF: predicated region fallthrough
CT: control target
= control target key end

     0   :  { %14 = vsyncpa [#allocation3], 0  ;;  %v455_v2 = vmov 0.0|0.0   ;;  %vm456_vm0 = vmmov 0   ;;  %v457_v4 = vmov 0.0   ;;  %s576_s0 = inlined_call_operand.vmem [shape: f32[2,16], index: 0, kind: input, shape index: {}]   ;;  %s577_s1 = inlined_call_operand.vmem [shape: f32[16,32], index: 1, kind: input, shape index: {}]   ;;  %s578_s2 = inlined_call_operand.vmem [shape: f32[1,32], index: 2, kind: input, shape index: {}]   ;;  %s579_s3 = inlined_call_operand.vmem [shape: f32[32,32], index: 3, kind: input, shape index: {}]   ;;  %s580_s4 = inlined_call_operand.vmem [shape: f32[1,32], index: 4, kind: input, shape index: {}]   ;;  %s581_s5 = inlined_call_operand.vmem [shape: f32[32,8], index: 5, kind: input, shape index: {}]   ;;  %s582_s6 = inlined_call_operand.vmem [shape: f32[1,8], index: 6, kind: input, shape index: {}]   ;;  %s583_s7 = inlined_call_operand.hbm [shape: f32[2,4], index: 7, kind: output, shape index: {0}]   ;;  %s584_s8 = inlined_call_operand.hbm [shape: f32[2,4], index: 8, kind: output, shape index: {1}]  }
   0x1   :  { %v31_v0 = vld [vmem:[%s577_s1] sm:$0xff]  ;;  %v32_v1 = vld [vmem:[%s577_s1 + $0x8] sm:$0xff]  ;;  %378 = vmatprep.subr.bf16.mxu0 %v455_v2  ;;  %353 = vmatprep.mubr.msk.f32.mxu0 %vm456_vm0, %v457_v4 }
   0x2   :  { %v379_v3 = vpack.c.bf16 %v32_v1, %v31_v0 }
   0x3   :  { %15 = vsyncpa [#allocation5], 0  ;;  %381 = vmatprep.subr.bf16.mxu1 %v455_v2  ;;  %364 = vmatprep.mubr.msk.f32.mxu1 %vm456_vm0, %v457_v4  ;;  %v30_v5 = vld [vmem:[%s576_s0] sm:$0x3]  ;;  %vm40_vm1 = vcmask 130048   ;;  %v116_v7 = vld [vmem:[%s579_s3 + $0x8] sm:$0xff] }
   0x4   :  { %380 = vmatpush3.bf16.msra.mxu0 %v379_v3  ;;  %v115_v6 = vld [vmem:[%s579_s3] sm:$0xff]  ;;  %v117_v8 = vld [vmem:[%s579_s3 + $0x10] sm:$0xff]  ;;  %v118_v10 = vld [vmem:[%s579_s3 + $0x18] sm:$0xff]  ;;  %vm126_vm2 = vcmask 261120   ;;  %vm295_vm3 = vcmask 25600  }
   0x5   :  { %387 = vmatprep.subr.bf16.mxu0 %v455_v2  ;;  %v382_v9 = vpack.c.bf16 %v116_v7, %v115_v6  ;;  %v385_v11 = vpack.c.bf16 %v118_v10, %v117_v8  ;;  %v330_v12 = vld [vmem:[%s578_s2] ss:$0 sm:$0xff]  ;;  %v202_v18 = vld [vmem:[%s581_s5 + $0x8] sm:$0xff]  ;;  %v203_v19 = vld [vmem:[%s581_s5 + $0x10] sm:$0xff] }
   0x6   :  { %v201_v17 = vld [vmem:[%s581_s5] sm:$0xff]  ;;  %v204_v21 = vld [vmem:[%s581_s5 + $0x18] sm:$0xff] }
   0x7   :  { %354 = vmatmul.mubr.msk.f32.vlgmr.msra.gmra.mrb[0].mxu0 %vm40_vm1, %v30_v5  ;;  %383 = vmatpush3.bf16.msra.mxu1 %v382_v9  ;;  %v388_v20 = vpack.c.bf16 %v202_v18, %v201_v17  ;;  %v391_v22 = vpack.c.bf16 %v204_v21, %v203_v19  ;;  %v332_v23 = vld [vmem:[%s580_s4] ss:$0 sm:$0xff]  ;;  %s458_s4 = smov [#allocation2]  }
   0x8   :  { %375 = vmatprep.mubr.msk.f32.mxu0 %vm456_vm0, %v457_v4  ;;  %384 = vmatprep.subr.bf16.mxu1 %v455_v2  ;;  %v334_v28 = vld [vmem:[%s582_s6] ss:$0 sm:$0xff]  ;;  %s308_s5 = sshll.u32 %s458_s4, 4  ;;  %s459_s6 = smov 124   ;;  %s309_s5 = int_to_ptr.vmem [resolvable:$true] %s308_s5 }
   0x9   :  { %389 = vmatpush3.bf16.msra.mxu0 %v388_v20  ;;  %s407_s29 = scalar_lea.vmem %s309_s5, 32  ;;  %p412_p1 = scmp.lt.s32.totalorder %s309_s5, %s309_s5 }
   0xa   :  { %390 = vmatprep.subr.bf16.mxu0 %v455_v2  ;;  %p408_p0 = scmp.ne.s32.totalorder %s309_s5, %s407_s29  ;;  %p413_p2 = scmp.lt.s32.totalorder %s407_s29, %s407_s29 }
   0xb   :  { %386 = vmatpush3.bf16.msra.mxu1 %v385_v11 }
   0xc   :  { %p414_p3 = por %p413_p2, %p412_p1 }
   0xd   :  { %392 = vmatpush3.bf16.msra.mxu0 %v391_v22 }
   0xe   :  { %p415_p4 = pnand %p414_p3, %p408_p0 }
  0xda   :  { %v110_v13 = vpop.f32.mrb[0].mxu0 }
  0xdb   :  { %v111_v14 = vadd.f32 %v330_v12, %v110_v13  ;;  %v355_v15 = vpop.f32.mrb[1].mxu0 }
  0xdd   :  { %399 = vtanh.f32 %v111_v14 }
  0xe7   :  { %v400_v16 = vpop.eup %399 }
  0xe8   :  { %365 = vmatmul.mubr.msk.f32.vlgmr.msra.gmra.mrb[0].mxu1 %vm126_vm2, %v400_v16 }
 0x1bb   :  { %v196_v24 = vpop.f32.mrb[0].mxu1 }
 0x1bc   :  { %v197_v25 = vadd.f32 %v332_v23, %v196_v24  ;;  %v366_v26 = vpop.f32.mrb[1].mxu1 }
 0x1be   :  { %401 = vtanh.f32 %v197_v25 }
 0x1c8   :  { %v402_v27 = vpop.eup %401 }
 0x1c9   :  { %376 = vmatmul.mubr.msk.f32.vlgmr.msra.gmra.mrb[2].mxu0 %vm126_vm2, %v402_v27 }
 0x29c   :  { %v281_v29 = vpop.f32.mrb[2].mxu0 }
 0x29d   :  { %v282_v30 = vadd.f32 %v334_v28, %v281_v29  ;;  %v377_v31 = vpop.f32.mrb[3].mxu0 }
 0x29f   :  { %v286_v32 = vand.u32 2147483647, %v282_v30  ;;  %v285_v38 = vmax.f32 %v282_v30, 0.0 }
 0x2a1   :  { %v287_v33 = vsub.f32 0.0, %v286_v32 }
 0x2a3   :  { %v288_v34 = vmul.f32 1.442695, %v287_v33 }
 0x2a5   :  { %403 = vpow2.f32 %v288_v34 }
 0x2af   :  { %v404_v35 = vpop.eup %403 }
 0x2b0   :  { %v290_v36 = vadd.f32 1.0, %v404_v35 }
 0x2b2   :  { %405 = vlog2.f32 %v290_v36 }
 0x2bc   :  { %v406_v37 = vpop.eup %405 }
 0x2bd   :  { %v292_v39 = vmul.f32 0.6931472, %v406_v37 }
 0x2bf   :  { %v293_v40 = vadd.f32 %v292_v39, %v285_v38 }
 0x2c1   :  { %v294_v41 = vadd.f32 1.0, %v293_v40 }
 0x2c3   :  { %298 = vrot.lane.b32.xlu0 %v294_v41, %s459_s6  ;;  %296 = vst.msk [vmem:[#allocation2] sm:$0x3] %vm295_vm3, %v294_v41 }
 0x2c4   :  { %418 = shalt.err (!%p415_p4)
}
 0x2c5   :  { %s419_s10 = scalar_lea.hbm %s583_s7, 32 }
 0x2c6   :  { %p420_p5 = scmp.ne.s32.totalorder %s583_s7, %s419_s10  ;;  %p423_p6 = scmp.lt.u32.totalorder %s419_s10, %s583_s7 }
 0x2c8   :  { %p425_p7 = pnand %p423_p6, %p420_p5 }
 0x2ca   :  { %428 = shalt.err (!%p425_p7)
}
 0x2cb   :  { %311 = dma.vmem_to_hbm [thread:$0]  %s309_s5, 32, %s583_s7, [#allocation3]  }
 0x2cc   :  { %s460_s16 = smov [#allocation4]  }
 0x2cd   :  { %s318_s17 = sshll.u32 %s460_s16, 4  ;;  %s319_s17 = int_to_ptr.vmem [resolvable:$true] %s318_s17 }
 0x2ce   :  { %s429_s0 = scalar_lea.vmem %s319_s17, 32  ;;  %p434_p9 = scmp.lt.s32.totalorder %s319_s17, %s319_s17 }
 0x2cf   :  { %p430_p8 = scmp.ne.s32.totalorder %s319_s17, %s429_s0  ;;  %p435_p10 = scmp.lt.s32.totalorder %s429_s0, %s429_s0 }
 0x2d1   :  { %p436_p11 = por %p435_p10, %p434_p9 }
 0x2d3   :  { %p437_p12 = pnand %p436_p11, %p430_p8 }
 0x335   :  { %v299_v42 = vpop.permute.xlu0 %298 }
 0x336   :  { %301 = vst.msk [vmem:[#allocation4] sm:$0x3] %vm295_vm3, %v299_v42 }
 0x337   :  { %440 = shalt.err (!%p437_p12)
}
 0x338   :  { %s441_s20 = scalar_lea.hbm %s584_s8, 32 }
 0x339   :  { %p442_p13 = scmp.ne.s32.totalorder %s584_s8, %s441_s20  ;;  %p445_p0 = scmp.lt.u32.totalorder %s441_s20, %s584_s8 }
 0x33b   :  { %p447_p1 = pnand %p445_p0, %p442_p13 }
 0x33d   :  { %450 = shalt.err (!%p447_p1)
}
 0x33e   :  { %321 = dma.vmem_to_hbm [thread:$0]  %s319_s17, 32, %s584_s8, [#allocation5]  }
 0x33f   :  { %451 = dma.done.wait [#allocation3], 32  }
 0x340   :  { %452 = vsyncadd [#allocation3], 4294967264 }
 0x341   :  { %453 = dma.done.wait [#allocation5], 32  }
 0x342   :  { %454 = vsyncadd [#allocation5], 4294967264 }
 0x343   :  { %328 = vsyncpa [#allocation3], 1 }
 0x344   :  { %329 = vsyncpa [#allocation5], 1 }

</bundles_post_ra>
